<compile_context>
chip_gen: v7x
topology: tpu7x:2x2x1
jax: 0.10.0
libtpu: 0.0.40
codegen_flags: <defaults>
</compile_context>

<pallas_src>
import jax
import jax.numpy as jnp
from jax.experimental import pallas as pl
from jax.experimental.pallas import tpu as pltpu

_LANE = 128
_SUBLANE = 8
_NUM_SLABS = 2                        # leading 'parallel' axis (v7x megacore)
_TARGET_TILE_BYTES = 4 * 1024 * 1024  # per-input block (8192 f32 rows)
_VMEM_LIMIT_BYTES = 32 * 1024 * 1024  # 2 inputs x 2 buffers x 4 MiB + headroom


def _round_up(x, m):
    return ((x + m - 1) // m) * m


def _make_sse_kernel(tile_rows, tiles_per_slab, valid_rows, needs_mask):
    """Per-slab SSE accumulator: sum((yp - yt)^2) into a resident (8,128) block."""
    n_sub = tile_rows // _SUBLANE

    def kernel(yp_ref, yt_ref, part_ref):
        k = pl.program_id(1)

        @pl.when(k == 0)
        def _init():
            part_ref[...] = jnp.zeros_like(part_ref)

        d = yp_ref[...].astype(jnp.float32) - yt_ref[...].astype(jnp.float32)
        sq = d * d
        if needs_mask:
            c = pl.program_id(0)
            base = (c * tiles_per_slab + k) * tile_rows
            row_ids = base + jax.lax.broadcasted_iota(jnp.int32, sq.shape, 0)
            # Rows at/after `valid_rows` are block overhang / empty-slot reads
            # of unspecified data -> select 0 (jnp.where is NaN/Inf safe).
            sq = jnp.where(row_ids < valid_rows, sq, 0.0)

        # (tile_rows,128) -> vreg-shaped partial; grouped reduce keeps the f32
        # add dependency chains short (independent per-group chains on VALU).
        if n_sub % 8 == 0:
            part = sq.reshape(n_sub // 8, 8, _SUBLANE, _LANE).sum(axis=0).sum(axis=0)
        else:
            part = sq.reshape(n_sub, _SUBLANE, _LANE).sum(axis=0)
        part_ref[...] += part.reshape(1, _SUBLANE, _LANE)

    return kernel


def pallas_loss_fn(y_pred, y_true, mean, log_var, alpha):
    assert y_pred.shape == y_true.shape
    assert mean.shape == log_var.shape

    n_y = int(y_pred.size)
    n_z = int(mean.size)
    itemsize = max(int(jnp.dtype(y_pred.dtype).itemsize),
                   int(jnp.dtype(y_true.dtype).itemsize))

    # ---- lane-dense (rows, 128) view; pad <=127 elements only if needed -----
    rows = pl.cdiv(n_y, _LANE)
    yp_flat = y_pred.reshape(-1)
    yt_flat = y_true.reshape(-1)
    rem = n_y % _LANE
    if rem != 0:
        # Only hit when the element count is not a multiple of 128.  Both
        # sides are zero-padded, so padded diffs contribute exactly 0.
        pad = _LANE - rem
        yp_flat = jnp.pad(yp_flat, (0, pad))
        yt_flat = jnp.pad(yt_flat, (0, pad))
    yp2 = yp_flat.reshape(rows, _LANE)
    yt2 = yt_flat.reshape(rows, _LANE)

    # ---- byte-sized tiles + slab split for megacore --------------------------
    target_rows = max(_SUBLANE,
                      (_TARGET_TILE_BYTES // (_LANE * itemsize))
                      // _SUBLANE * _SUBLANE)
    num_slabs = _NUM_SLABS if rows > target_rows else 1
    total_slots = _round_up(max(num_slabs, pl.cdiv(rows, target_rows)), num_slabs)
    tile_rows = _round_up(pl.cdiv(rows, total_slots), _SUBLANE)
    num_tiles = pl.cdiv(rows, tile_rows)            # tiles holding real data
    tiles_per_slab = pl.cdiv(num_tiles, num_slabs)
    needs_mask = (num_slabs * tiles_per_slab * tile_rows) != rows

    def in_index_map(c, k):
        t = c * tiles_per_slab + k
        # Clamp so an empty trailing slot re-reads a valid tile; its nominal
        # rows are >= `rows`, so the in-kernel mask zeroes its contribution.
        return (jnp.minimum(t, num_tiles - 1), 0)

    kernel = _make_sse_kernel(tile_rows, tiles_per_slab, rows, needs_mask)

    partials = pl.pallas_call(
        kernel,
        grid=(num_slabs, tiles_per_slab),
        in_specs=[
            pl.BlockSpec((tile_rows, _LANE), in_index_map),
            pl.BlockSpec((tile_rows, _LANE), in_index_map),
        ],
        out_specs=pl.BlockSpec((1, _SUBLANE, _LANE), lambda c, k: (c, 0, 0)),
        out_shape=jax.ShapeDtypeStruct((num_slabs, _SUBLANE, _LANE),
                                       jnp.float32),
        compiler_params=pltpu.CompilerParams(
            dimension_semantics=("parallel", "arbitrary"),
            vmem_limit_bytes=_VMEM_LIMIT_BYTES),
        cost_estimate=pl.CostEstimate(
            flops=3 * rows * _LANE,
            transcendentals=0,
            bytes_accessed=2 * rows * _LANE * itemsize
                           + num_slabs * _SUBLANE * _LANE * 4),
    )(yp2, yt2)

    # ---- tiny fusable epilogue: combine partials, sqrt, KLD, alpha-combine ---
    sse = jnp.sum(partials)
    recon = jnp.sqrt(sse / n_y)
    mu = mean.astype(jnp.float32)
    lv = log_var.astype(jnp.float32)
    # mean(1 + x) = 1 + mean(x): fold the constant into the scalar epilogue.
    kld = -0.5 * (jnp.sum(lv - mu * mu - jnp.exp(lv)) / n_z + 1.0)
    return recon + alpha * kld


def reference_loss_fn(y_pred, y_true, mean, log_var, alpha):
    yp = y_pred.astype(jnp.float32)
    yt = y_true.astype(jnp.float32)
    recon = jnp.sqrt(jnp.mean((yp - yt) ** 2))
    kld = -0.5 * jnp.mean(1.0 + log_var - mean ** 2 - jnp.exp(log_var))
    return recon + alpha * kld


if __name__ == "__main__":
    key = jax.random.PRNGKey(0)
    k1, k2, k3, k4, k5, k6 = jax.random.split(key, 6)

    # Shapes consistent with a VAE forward:
    #   y_pred / y_true : reconstructed images, NCHW = (2, 4, 16, 16)
    #   mean / log_var  : latent stats, (2, 32)
    y_pred = jax.random.normal(k1, (2, 4, 16, 16), dtype=jnp.float32)
    y_true = jax.random.normal(k2, (2, 4, 16, 16), dtype=jnp.float32)
    mean = jax.random.normal(k3, (2, 32), dtype=jnp.float32)
    log_var = 0.1 * jax.random.normal(k4, (2, 32), dtype=jnp.float32)
    alpha = 0.5  # module hyperparameter

    loss = jax.block_until_ready(
        pallas_loss_fn(y_pred, y_true, mean, log_var, alpha))
    ref = reference_loss_fn(y_pred, y_true, mean, log_var, alpha)
    assert jnp.allclose(loss, ref, rtol=1e-5, atol=1e-5), (loss, ref)

    # Jitted with a traced alpha: no recompile / no concretization error.
    jitted = jax.jit(pallas_loss_fn)
    loss_j = jax.block_until_ready(
        jitted(y_pred, y_true, mean, log_var, jnp.float32(0.25)))
    ref_j = reference_loss_fn(y_pred, y_true, mean, log_var, 0.25)
    assert jnp.allclose(loss_j, ref_j, rtol=1e-5, atol=1e-5), (loss_j, ref_j)

    # Ragged element count: exercises the <=127-element pad + in-kernel mask.
    yp_r = jax.random.normal(k5, (3, 5, 7, 11), dtype=jnp.float32)
    yt_r = jax.random.normal(k6, (3, 5, 7, 11), dtype=jnp.float32)
    loss_r = jax.block_until_ready(
        pallas_loss_fn(yp_r, yt_r, mean, log_var, alpha))
    ref_r = reference_loss_fn(yp_r, yt_r, mean, log_var, alpha)
    assert jnp.allclose(loss_r, ref_r, rtol=1e-4, atol=1e-4), (loss_r, ref_r)

    # bf16-on-the-wire case: widening happens in-kernel, not in the wrapper.
    yp_bf = y_pred.astype(jnp.bfloat16)
    yt_bf = y_true.astype(jnp.bfloat16)
    loss_bf = jax.block_until_ready(
        pallas_loss_fn(yp_bf, yt_bf, mean, log_var, alpha))
    ref_bf = reference_loss_fn(yp_bf, yt_bf, mean, log_var, alpha)
    assert jnp.allclose(loss_bf, ref_bf, rtol=1e-3, atol=1e-3), (loss_bf, ref_bf)

    # Multi-tile, two-slab path (rows > 8192): grid=(2, k), megacore-shardable.
    kb1, kb2 = jax.random.split(k6)
    yp_big = jax.random.normal(kb1, (4, 8, 256, 256), dtype=jnp.float32)
    yt_big = jax.random.normal(kb2, (4, 8, 256, 256), dtype=jnp.float32)
    loss_b = jax.block_until_ready(
        pallas_loss_fn(yp_big, yt_big, mean, log_var, alpha))
    ref_b = reference_loss_fn(yp_big, yt_big, mean, log_var, alpha)
    assert jnp.allclose(loss_b, ref_b, rtol=1e-4, atol=1e-4), (loss_b, ref_b)

    print("KERNEL_OK")
</pallas_src>

<mosaic_0001>
module attributes {stable_mosaic.version = 11 : i64} {
  func.func @kernel(%arg0: i32, %arg1: i32, %arg2: memref<16x128xf32, #tpu.memory_space<vmem>>, %arg3: memref<16x128xf32, #tpu.memory_space<vmem>>, %arg4: memref<1x8x128xf32, #tpu.memory_space<vmem>>) attributes {dimension_semantics = [#tpu.dimension_semantics<parallel>, #tpu.dimension_semantics<arbitrary>], iteration_bounds = array<i64: 1, 1>, scalar_prefetch = 0 : i64, scratch_operands = 0 : i64, tpu.core_type = #tpu.core_type<tc>, window_params = [{transform_indices = @transform_0, window_bounds = array<i64: 16, 128>}, {transform_indices = @transform_1, window_bounds = array<i64: 16, 128>}, {transform_indices = @transform_2, window_bounds = array<i64: 1, 8, 128>}]} {
    %c0_i32 = arith.constant 0 : i32
    %0 = arith.cmpi eq, %arg1, %c0_i32 : i32
    %1 = arith.extui %0 : i1 to i32
    %c0_i32_0 = arith.constant 0 : i32
    %2 = arith.cmpi ne, %1, %c0_i32_0 : i32
    scf.if %2 {
      %cst_10 = arith.constant 0.000000e+00 : f32
      %13 = vector.broadcast %cst_10 : f32 to vector<1x8x128xf32>
      %c0_11 = arith.constant 0 : index
      %c0_12 = arith.constant 0 : index
      %c0_13 = arith.constant 0 : index
      %14 = vector.load %arg4[%c0_11, %c0_12, %c0_13] : memref<1x8x128xf32, #tpu.memory_space<vmem>>, vector<1x8x128xf32>
      tpu.vector_store %arg4[%c0_11, %c0_12, %c0_13], %13 {strides = array<i32>} : memref<1x8x128xf32, #tpu.memory_space<vmem>>, vector<1x8x128xf32>,
    } else {
    }
    %c0 = arith.constant 0 : index
    %c0_1 = arith.constant 0 : index
    %3 = vector.load %arg2[%c0, %c0_1] : memref<16x128xf32, #tpu.memory_space<vmem>>, vector<16x128xf32>
    %c0_2 = arith.constant 0 : index
    %c0_3 = arith.constant 0 : index
    %4 = vector.load %arg3[%c0_2, %c0_3] : memref<16x128xf32, #tpu.memory_space<vmem>>, vector<16x128xf32>
    %5 = arith.subf %3, %4 : vector<16x128xf32>
    %6 = arith.mulf %5, %5 : vector<16x128xf32>
    %7 = vector.shape_cast %6 : vector<16x128xf32> to vector<2x8x128xf32>
    %cst = arith.constant dense<0.000000e+00> : vector<8x128xf32>
    %8 = vector.multi_reduction <add>, %7, %cst [0] : vector<2x8x128xf32> to vector<8x128xf32>
    %c0_4 = arith.constant 0 : index
    %c0_5 = arith.constant 0 : index
    %c0_6 = arith.constant 0 : index
    %9 = vector.load %arg4[%c0_4, %c0_5, %c0_6] : memref<1x8x128xf32, #tpu.memory_space<vmem>>, vector<1x8x128xf32>
    %10 = vector.shape_cast %8 : vector<8x128xf32> to vector<1x8x128xf32>
    %11 = arith.addf %9, %10 : vector<1x8x128xf32>
    %c0_7 = arith.constant 0 : index
    %c0_8 = arith.constant 0 : index
    %c0_9 = arith.constant 0 : index
    %12 = vector.load %arg4[%c0_7, %c0_8, %c0_9] : memref<1x8x128xf32, #tpu.memory_space<vmem>>, vector<1x8x128xf32>
    tpu.vector_store %arg4[%c0_7, %c0_8, %c0_9], %11 {strides = array<i32>} : memref<1x8x128xf32, #tpu.memory_space<vmem>>, vector<1x8x128xf32>,
    return
  }
  func.func @transform_0(%arg0: i32, %arg1: i32) -> (i32, i32) {
    %c1_i32 = arith.constant 1 : i32
    %0 = arith.muli %arg0, %c1_i32 : i32
    %1 = arith.addi %0, %arg1 : i32
    %c0_i32 = arith.constant 0 : i32
    %2 = arith.minsi %1, %c0_i32 : i32
    %c0_i32_0 = arith.constant 0 : i32
    %c0_i32_1 = arith.constant 0 : i32
    return %2, %c0_i32_0 : i32, i32
  }
  func.func @transform_1(%arg0: i32, %arg1: i32) -> (i32, i32) {
    %c1_i32 = arith.constant 1 : i32
    %0 = arith.muli %arg0, %c1_i32 : i32
    %1 = arith.addi %0, %arg1 : i32
    %c0_i32 = arith.constant 0 : i32
    %2 = arith.minsi %1, %c0_i32 : i32
    %c0_i32_0 = arith.constant 0 : i32
    %c0_i32_1 = arith.constant 0 : i32
    return %2, %c0_i32_0 : i32, i32
  }
  func.func @transform_2(%arg0: i32, %arg1: i32) -> (i32, i32, i32) {
    %c0_i32 = arith.constant 0 : i32
    %c0_i32_0 = arith.constant 0 : i32
    %c0_i32_1 = arith.constant 0 : i32
    return %arg0, %c0_i32, %c0_i32_0 : i32, i32, i32
  }
}

</mosaic_0001>

<bundles_post_ra>
// kernel: tpu_custom_call.1
= control target key start
LH: loop header
LB: loop body
LE: loop exit
PB: predicated region body
PF: predicated region fallthrough
CT: control target
= control target key end

     0   :  { %7 = vsyncpa [#allocation3], 0  ;;  %s231_s0 = inlined_call_operand.hbm [shape: f32[16,128], index: 0, kind: input, shape index: {}]   ;;  %s232_s1 = inlined_call_operand.hbm [shape: f32[16,128], index: 1, kind: input, shape index: {}]   ;;  %s233_s2 = inlined_call_operand.hbm [shape: f32[1,8,128], index: 2, kind: output, shape index: {}]  }
   0x1   :  { %8 = vsyncpa [#allocation6], 0 }
   0x2   :  { %9 = vsyncpa [#allocation4], 0  ;;  %s175_s9 = smov [#allocation2]   ;;  %s103_s13 = scalar_lea.hbm %s231_s0, 256 }
   0x3   :  { %s21_s10 = sshll.u32 %s175_s9, 4  ;;  %p104_p0 = scmp.ne.s32.totalorder %s231_s0, %s103_s13  ;;  %s22_s10 = int_to_ptr.vmem [resolvable:$true] %s21_s10 }
   0x4   :  { %p107_p1 = scmp.lt.u32.totalorder %s103_s13, %s231_s0 }
   0x6   :  { %p109_p2 = pnand %p107_p1, %p104_p0 }
   0x8   :  { %112 = shalt.err (!%p109_p2)
}
   0x9   :  { %s113_s18 = scalar_lea.vmem %s22_s10, 256  ;;  %p118_p4 = scmp.lt.s32.totalorder %s22_s10, %s22_s10 }
   0xa   :  { %p114_p3 = scmp.ne.s32.totalorder %s22_s10, %s113_s18  ;;  %p119_p5 = scmp.lt.s32.totalorder %s113_s18, %s113_s18 }
   0xc   :  { %p120_p6 = por %p119_p5, %p118_p4 }
   0xe   :  { %p121_p7 = pnand %p120_p6, %p114_p3 }
  0x10   :  { %124 = shalt.err (!%p121_p7)
}
  0x11   :  { %s176_s19 = smov 128   ;;  %s177_s20 = smov 8  }
  0x12   :  { %27 = dma.hbm_to_vmem [thread:$0]  %s231_s0, 256, %s22_s10, [#allocation3], %s176_s19, %s176_s19, %s177_s20  }
  0x13   :  { %s178_s23 = smov [#allocation5]   ;;  %s125_s27 = scalar_lea.hbm %s232_s1, 256 }
  0x14   :  { %s39_s24 = sshll.u32 %s178_s23, 4  ;;  %p126_p8 = scmp.ne.s32.totalorder %s232_s1, %s125_s27  ;;  %s40_s24 = int_to_ptr.vmem [resolvable:$true] %s39_s24 }
  0x15   :  { %p129_p9 = scmp.lt.u32.totalorder %s125_s27, %s232_s1 }
  0x17   :  { %p131_p10 = pnand %p129_p9, %p126_p8 }
  0x19   :  { %134 = shalt.err (!%p131_p10)
}
  0x1a   :  { %s135_s4 = scalar_lea.vmem %s40_s24, 256  ;;  %p140_p12 = scmp.lt.s32.totalorder %s40_s24, %s40_s24 }
  0x1b   :  { %p136_p11 = scmp.ne.s32.totalorder %s40_s24, %s135_s4  ;;  %p141_p13 = scmp.lt.s32.totalorder %s135_s4, %s135_s4 }
  0x1d   :  { %p142_p0 = por %p141_p13, %p140_p12 }
  0x1f   :  { %p143_p1 = pnand %p142_p0, %p136_p11 }
  0x21   :  { %146 = shalt.err (!%p143_p1)
}
  0x22   :  { %45 = dma.hbm_to_vmem [thread:$0]  %s232_s1, 256, %s40_s24, [#allocation6], %s176_s19, %s176_s19, %s177_s20  }
  0x23   :  { %169 = dma.done.wait [#allocation3], 256  }
  0x24   :  { %170 = vsyncadd [#allocation3], 4294967040 }
  0x25   :  { %171 = dma.done.wait [#allocation6], 256  }
  0x26   :  { %172 = vsyncadd [#allocation6], 4294967040  ;;  %v65_v0 = vld [vmem:[#allocation2] sm:$0xff]  ;;  %v66_v1 = vld [vmem:[#allocation2 + $0x8] sm:$0xff]  ;;  %s179_s6 = smov [#allocation7]  }
  0x27   :  { %v67_v2 = vld [vmem:[#allocation5] sm:$0xff]  ;;  %v68_v3 = vld [vmem:[#allocation5 + $0x8] sm:$0xff]  ;;  %s83_s7 = sshll.u32 %s179_s6, 4  ;;  %s84_s7 = int_to_ptr.vmem [resolvable:$true] %s83_s7 }
  0x28   :  { %v69_v4 = vsub.f32 %v65_v0, %v67_v2  ;;  %v70_v5 = vsub.f32 %v66_v1, %v68_v3  ;;  %s147_s8 = scalar_lea.vmem %s84_s7, 128  ;;  %p152_p3 = scmp.lt.s32.totalorder %s84_s7, %s84_s7 }
  0x29   :  { %p148_p2 = scmp.ne.s32.totalorder %s84_s7, %s147_s8  ;;  %p153_p4 = scmp.lt.s32.totalorder %s147_s8, %s147_s8 }
  0x2a   :  { %v71_v6 = vmul.f32 %v69_v4, %v69_v4  ;;  %v72_v7 = vmul.f32 %v70_v5, %v70_v5 }
  0x2b   :  { %p154_p5 = por %p153_p4, %p152_p3 }
  0x2c   :  { %v73_v8 = vadd.f32 %v72_v7, %v71_v6 }
  0x2d   :  { %p155_p6 = pnand %p154_p5, %p148_p2 }
  0x2e   :  { %76 = vst [vmem:[#allocation7] sm:$0xff] %v73_v8 }
  0x2f   :  { %158 = shalt.err (!%p155_p6)
}
  0x30   :  { %s159_s10 = scalar_lea.hbm %s233_s2, 128 }
  0x31   :  { %p160_p7 = scmp.ne.s32.totalorder %s233_s2, %s159_s10  ;;  %p163_p8 = scmp.lt.u32.totalorder %s159_s10, %s233_s2 }
  0x33   :  { %p165_p9 = pnand %p163_p8, %p160_p7 }
  0x35   :  { %168 = shalt.err (!%p165_p9)
}
  0x36   :  { %86 = dma.vmem_to_hbm [thread:$0]  %s84_s7, 128, %s233_s2, [#allocation4]  }
  0x37   :  { %173 = dma.done.wait [#allocation4], 128  }
  0x38   :  { %174 = vsyncadd [#allocation4], 4294967168 }
  0x39   :  { %90 = vsyncpa [#allocation3], 1 }
  0x3a   :  { %91 = vsyncpa [#allocation6], 1 }
  0x3b   :  { %92 = vsyncpa [#allocation4], 1 }

</bundles_post_ra>
